<compile_context>
chip_gen: v7x
topology: tpu7x:2x2x1
jax: 0.10.0
libtpu: 0.0.40
codegen_flags: <defaults>
</compile_context>

<pallas_src>
import functools

import jax
import jax.numpy as jnp
from jax.experimental import pallas as pl
from jax.experimental.pallas import tpu as pltpu


LANES = 128
SUBLANES = 8
# Row tile: 4096 rows x 128 lanes x 4 B = 2 MiB per f32 stream per pipeline
# buffer -> 8 MiB total for both double-buffered streams.  Fits the scoped
# VMEM default on v5e (16 MiB) / v6e (32 MiB) / v7x (32 MiB) with headroom
# while amortizing per-grid-step overhead to <10% even at v7x HBM bandwidth.
MAX_TILE_ROWS = 4096
# Pad granularity for the flattened inputs: one 16x128 chunk keeps the row
# count a multiple of 16 (also safe for bf16 sublane packing).
MIN_CHUNK = 16 * LANES


def _dice_partials_kernel(x_ref, t_ref, inter_ref, ssum_ref, tsum_ref, *,
                          tile_rows, blocks_per_half, full_blocks, n_valid,
                          need_mask):
    p = pl.program_id(0)   # which half of the reduction (parallel axis)
    j = pl.program_id(1)   # reduction step within the half (arbitrary axis)

    @pl.when(j == 0)
    def _():
        inter_ref[...] = jnp.zeros_like(inter_ref)
        ssum_ref[...] = jnp.zeros_like(ssum_ref)
        tsum_ref[...] = jnp.zeros_like(tsum_ref)

    x = x_ref[...].astype(jnp.float32)
    t = t_ref[...].astype(jnp.float32)
    # Single-transcendental sigmoid: sigmoid(x) == 0.5 * tanh(0.5 * x) + 0.5.
    # Keeps the EUP slot at one push per input vreg.
    s = 0.5 * jnp.tanh(0.5 * x) + 0.5

    nsub = tile_rows // SUBLANES

    def accumulate(s_v, t_v):
        st = s_v * t_v
        # Per-vreg partial sums: reduce only the leading (vreg) axis -> pure
        # VPU adds each step; the cross-lane reduction is deferred to the
        # wrapper.
        inter_ref[...] += st.reshape(nsub, SUBLANES, LANES).sum(
            axis=0, keepdims=True)
        ssum_ref[...] += s_v.reshape(nsub, SUBLANES, LANES).sum(
            axis=0, keepdims=True)
        tsum_ref[...] += t_v.reshape(nsub, SUBLANES, LANES).sum(
            axis=0, keepdims=True)

    if need_mask:
        blk = p * blocks_per_half + j          # logical block index
        is_tail = blk >= full_blocks           # overlaps padding / duplicate

        @pl.when(jnp.logical_not(is_tail))
        def _():
            accumulate(s, t)

        @pl.when(is_tail)
        def _():
            # Only the ragged tail block (and the duplicated clamped block of
            # the second half when the logical block count exceeds the real
            # one) pays for the iota mask; every other step skips this branch
            # at runtime.  Mask uses the LOGICAL block index so the duplicate
            # block (which re-reads real data via the clamped index_map)
            # contributes exactly zero.
            row = jax.lax.broadcasted_iota(jnp.int32, (tile_rows, LANES), 0)
            lane = jax.lax.broadcasted_iota(jnp.int32, (tile_rows, LANES), 1)
            flat = (blk * tile_rows + row) * LANES + lane
            valid = flat < n_valid
            accumulate(jnp.where(valid, s, 0.0), jnp.where(valid, t, 0.0))
    else:
        accumulate(s, t)


def dice_loss(inputs, target, *, max_tile_rows=MAX_TILE_ROWS):
    """Pallas TPU implementation of DiceLoss.forward (returns scalar f32)."""
    x = inputs.reshape(-1)
    t = target.reshape(-1)
    n = x.shape[0]

    # Pad only to the minimal 16x128 chunk so the (rows, 128) reshape is
    # legal; the pad value is irrelevant (tail is masked in-kernel), and for
    # already-aligned shapes no copy is made at all.
    padded = pl.cdiv(n, MIN_CHUNK) * MIN_CHUNK
    if padded != n:
        x = jnp.pad(x, (0, padded - n))
        t = jnp.pad(t, (0, padded - n))

    rows = padded // LANES
    x2 = x.reshape(rows, LANES)
    t2 = t.reshape(rows, LANES)

    tile_rows = min(max_tile_rows, rows)       # rows is a multiple of 16
    block_elems = tile_rows * LANES
    n_blocks = pl.cdiv(rows, tile_rows)
    blocks_per_half = pl.cdiv(n_blocks, 2)     # 2-way split for v7x megacore
    grid = (2, blocks_per_half)
    full_blocks = n // block_elems             # blocks that are 100% valid
    need_mask = (2 * blocks_per_half * block_elems) != n

    def in_map(p, j):
        # Clamp so any overhanging / duplicated block of the second half stays
        # in bounds; its contribution is zeroed by the gated in-kernel mask.
        return (jnp.minimum(p * blocks_per_half + j, n_blocks - 1), 0)

    in_spec = pl.BlockSpec((tile_rows, LANES), in_map)
    out_spec = pl.BlockSpec((1, SUBLANES, LANES), lambda p, j: (p, 0, 0))
    out_sds = jax.ShapeDtypeStruct((2, SUBLANES, LANES), jnp.float32)

    kernel = functools.partial(
        _dice_partials_kernel,
        tile_rows=tile_rows,
        blocks_per_half=blocks_per_half,
        full_blocks=full_blocks,
        n_valid=n,
        need_mask=need_mask,
    )

    out_bytes = 3 * 2 * SUBLANES * LANES * 4
    cost = pl.CostEstimate(
        flops=6 * rows * LANES,
        transcendentals=rows * LANES,
        bytes_accessed=(x2.size * x2.dtype.itemsize
                        + t2.size * t2.dtype.itemsize
                        + out_bytes),
    )

    inter_p, ssum_p, tsum_p = pl.pallas_call(
        kernel,
        out_shape=(out_sds, out_sds, out_sds),
        grid_spec=pltpu.PrefetchScalarGridSpec(
            num_scalar_prefetch=0,
            grid=grid,
            in_specs=[in_spec, in_spec],
            out_specs=(out_spec, out_spec, out_spec),
        ),
        compiler_params=pltpu.CompilerParams(
            dimension_semantics=("parallel", "arbitrary"),
            vmem_limit_bytes=32 * 1024 * 1024,
        ),
        cost_estimate=cost,
    )(x2, t2)

    smooth = 1.0
    intersection = jnp.sum(inter_p)
    s_sum = jnp.sum(ssum_p)
    t_sum = jnp.sum(tsum_p)
    dice = (2.0 * intersection + smooth) / (s_sum + t_sum + smooth)
    return 1.0 - dice


def dice_loss_ref(inputs, target):
    s = jax.nn.sigmoid(inputs.reshape(-1).astype(jnp.float32))
    t = target.reshape(-1).astype(jnp.float32)
    inter = jnp.sum(s * t)
    dice = (2.0 * inter + 1.0) / (jnp.sum(s) + jnp.sum(t) + 1.0)
    return 1.0 - dice


if __name__ == "__main__":
    key = jax.random.PRNGKey(0)
    k1, k2, k3, k4 = jax.random.split(key, 4)

    # 1) NCHW logits + binary targets, matching a UNet-style segmentation head
    #    (aligned case: no padding, no mask path generated).
    x = jax.random.normal(k1, (2, 4, 16, 16), dtype=jnp.float32)
    t = (jax.random.uniform(k2, (2, 4, 16, 16)) > 0.5).astype(jnp.float32)
    loss = jax.block_until_ready(dice_loss(x, t))
    ref = jax.block_until_ready(dice_loss_ref(x, t))
    assert jnp.allclose(loss, ref, atol=1e-5, rtol=1e-5), (loss, ref)

    # 2) Regression: ragged tail + odd logical block count (exercises the
    #    gated mask and the clamped duplicate block of the second grid half).
    xr = jax.random.normal(k3, (6107,), dtype=jnp.float32)
    tr = (jax.random.uniform(k4, (6107,)) > 0.5).astype(jnp.float32)
    loss_r = jax.block_until_ready(dice_loss(xr, tr, max_tile_rows=16))
    ref_r = jax.block_until_ready(dice_loss_ref(xr, tr))
    assert jnp.allclose(loss_r, ref_r, atol=1e-5, rtol=1e-5), (loss_r, ref_r)

    # 3) Narrow-dtype streaming: bf16 logits / bf16 targets go straight into
    #    the kernel (cast to f32 happens in VMEM, halving HBM traffic).
    xb = x.astype(jnp.bfloat16)
    tb = t.astype(jnp.bfloat16)
    loss_b = jax.block_until_ready(dice_loss(xb, tb))
    ref_b = jax.block_until_ready(dice_loss_ref(xb, tb))
    assert jnp.allclose(loss_b, ref_b, atol=1e-4, rtol=1e-4), (loss_b, ref_b)

    print("KERNEL_OK")
</pallas_src>

<mosaic_0001>
module attributes {stable_mosaic.version = 11 : i64} {
  func.func @_dice_partials_kernel(%arg0: i32, %arg1: i32, %arg2: memref<16x128xf32, #tpu.memory_space<vmem>>, %arg3: memref<16x128xf32, #tpu.memory_space<vmem>>, %arg4: memref<1x8x128xf32, #tpu.memory_space<vmem>>, %arg5: memref<1x8x128xf32, #tpu.memory_space<vmem>>, %arg6: memref<1x8x128xf32, #tpu.memory_space<vmem>>) attributes {dimension_semantics = [#tpu.dimension_semantics<parallel>, #tpu.dimension_semantics<arbitrary>], iteration_bounds = array<i64: 2, 1>, scalar_prefetch = 0 : i64, scratch_operands = 0 : i64, tpu.core_type = #tpu.core_type<tc>, window_params = [{transform_indices = @transform_0, window_bounds = array<i64: 16, 128>}, {transform_indices = @transform_1, window_bounds = array<i64: 16, 128>}, {transform_indices = @transform_2, window_bounds = array<i64: 1, 8, 128>}, {transform_indices = @transform_3, window_bounds = array<i64: 1, 8, 128>}, {transform_indices = @transform_4, window_bounds = array<i64: 1, 8, 128>}]} {
    %c0_i32 = arith.constant 0 : i32
    %0 = arith.cmpi eq, %arg1, %c0_i32 : i32
    %1 = arith.extui %0 : i1 to i32
    %c0_i32_0 = arith.constant 0 : i32
    %2 = arith.cmpi ne, %1, %c0_i32_0 : i32
    scf.if %2 {
      %cst_9 = arith.constant 0.000000e+00 : f32
      %20 = vector.broadcast %cst_9 : f32 to vector<1x8x128xf32>
      %c0_10 = arith.constant 0 : index
      %c0_11 = arith.constant 0 : index
      %c0_12 = arith.constant 0 : index
      %21 = vector.load %arg4[%c0_10, %c0_11, %c0_12] : memref<1x8x128xf32, #tpu.memory_space<vmem>>, vector<1x8x128xf32>
      tpu.vector_store %arg4[%c0_10, %c0_11, %c0_12], %20 {strides = array<i32>} : memref<1x8x128xf32, #tpu.memory_space<vmem>>, vector<1x8x128xf32>,
      %cst_13 = arith.constant 0.000000e+00 : f32
      %22 = vector.broadcast %cst_13 : f32 to vector<1x8x128xf32>
      %c0_14 = arith.constant 0 : index
      %c0_15 = arith.constant 0 : index
      %c0_16 = arith.constant 0 : index
      %23 = vector.load %arg5[%c0_14, %c0_15, %c0_16] : memref<1x8x128xf32, #tpu.memory_space<vmem>>, vector<1x8x128xf32>
      tpu.vector_store %arg5[%c0_14, %c0_15, %c0_16], %22 {strides = array<i32>} : memref<1x8x128xf32, #tpu.memory_space<vmem>>, vector<1x8x128xf32>,
      %cst_17 = arith.constant 0.000000e+00 : f32
      %24 = vector.broadcast %cst_17 : f32 to vector<1x8x128xf32>
      %c0_18 = arith.constant 0 : index
      %c0_19 = arith.constant 0 : index
      %c0_20 = arith.constant 0 : index
      %25 = vector.load %arg6[%c0_18, %c0_19, %c0_20] : memref<1x8x128xf32, #tpu.memory_space<vmem>>, vector<1x8x128xf32>
      tpu.vector_store %arg6[%c0_18, %c0_19, %c0_20], %24 {strides = array<i32>} : memref<1x8x128xf32, #tpu.memory_space<vmem>>, vector<1x8x128xf32>,
    } else {
    }
    %c0 = arith.constant 0 : index
    %c0_1 = arith.constant 0 : index
    %3 = vector.load %arg2[%c0, %c0_1] : memref<16x128xf32, #tpu.memory_space<vmem>>, vector<16x128xf32>
    %c0_2 = arith.constant 0 : index
    %c0_3 = arith.constant 0 : index
    %4 = vector.load %arg3[%c0_2, %c0_3] : memref<16x128xf32, #tpu.memory_space<vmem>>, vector<16x128xf32>
    %cst = arith.constant 5.000000e-01 : f32
    %5 = vector.broadcast %cst : f32 to vector<16x128xf32>
    %6 = arith.mulf %5, %3 : vector<16x128xf32>
    %7 = math.tanh %6 : vector<16x128xf32>
    %cst_4 = arith.constant 5.000000e-01 : f32
    %8 = vector.broadcast %cst_4 : f32 to vector<16x128xf32>
    %9 = arith.mulf %8, %7 : vector<16x128xf32>
    %cst_5 = arith.constant 5.000000e-01 : f32
    %10 = vector.broadcast %cst_5 : f32 to vector<16x128xf32>
    %11 = arith.addf %9, %10 : vector<16x128xf32>
    %c1_i32 = arith.constant 1 : i32
    %12 = arith.muli %arg0, %c1_i32 : i32
    %13 = arith.addi %12, %arg1 : i32
    %c1_i32_6 = arith.constant 1 : i32
    %14 = arith.cmpi sge, %13, %c1_i32_6 : i32
    %true = arith.constant true
    %15 = arith.xori %14, %true : i1
    %16 = arith.extui %15 : i1 to i32
    %c0_i32_7 = arith.constant 0 : i32
    %17 = arith.cmpi ne, %16, %c0_i32_7 : i32
    scf.if %17 {
      %20 = arith.mulf %11, %4 : vector<16x128xf32>
      %c0_9 = arith.constant 0 : index
      %c0_10 = arith.constant 0 : index
      %c0_11 = arith.constant 0 : index
      %21 = vector.load %arg4[%c0_9, %c0_10, %c0_11] : memref<1x8x128xf32, #tpu.memory_space<vmem>>, vector<1x8x128xf32>
      %22 = vector.shape_cast %20 : vector<16x128xf32> to vector<2x8x128xf32>
      %cst_12 = arith.constant dense<0.000000e+00> : vector<8x128xf32>
      %23 = vector.multi_reduction <add>, %22, %cst_12 [0] : vector<2x8x128xf32> to vector<8x128xf32>
      %24 = vector.shape_cast %23 : vector<8x128xf32> to vector<1x8x128xf32>
      %25 = arith.addf %21, %24 : vector<1x8x128xf32>
      %c0_13 = arith.constant 0 : index
      %c0_14 = arith.constant 0 : index
      %c0_15 = arith.constant 0 : index
      %26 = vector.load %arg4[%c0_13, %c0_14, %c0_15] : memref<1x8x128xf32, #tpu.memory_space<vmem>>, vector<1x8x128xf32>
      tpu.vector_store %arg4[%c0_13, %c0_14, %c0_15], %25 {strides = array<i32>} : memref<1x8x128xf32, #tpu.memory_space<vmem>>, vector<1x8x128xf32>,
      %c0_16 = arith.constant 0 : index
      %c0_17 = arith.constant 0 : index
      %c0_18 = arith.constant 0 : index
      %27 = vector.load %arg5[%c0_16, %c0_17, %c0_18] : memref<1x8x128xf32, #tpu.memory_space<vmem>>, vector<1x8x128xf32>
      %28 = vector.shape_cast %11 : vector<16x128xf32> to vector<2x8x128xf32>
      %cst_19 = arith.constant dense<0.000000e+00> : vector<8x128xf32>
      %29 = vector.multi_reduction <add>, %28, %cst_19 [0] : vector<2x8x128xf32> to vector<8x128xf32>
      %30 = vector.shape_cast %29 : vector<8x128xf32> to vector<1x8x128xf32>
      %31 = arith.addf %27, %30 : vector<1x8x128xf32>
      %c0_20 = arith.constant 0 : index
      %c0_21 = arith.constant 0 : index
      %c0_22 = arith.constant 0 : index
      %32 = vector.load %arg5[%c0_20, %c0_21, %c0_22] : memref<1x8x128xf32, #tpu.memory_space<vmem>>, vector<1x8x128xf32>
      tpu.vector_store %arg5[%c0_20, %c0_21, %c0_22], %31 {strides = array<i32>} : memref<1x8x128xf32, #tpu.memory_space<vmem>>, vector<1x8x128xf32>,
      %c0_23 = arith.constant 0 : index
      %c0_24 = arith.constant 0 : index
      %c0_25 = arith.constant 0 : index
      %33 = vector.load %arg6[%c0_23, %c0_24, %c0_25] : memref<1x8x128xf32, #tpu.memory_space<vmem>>, vector<1x8x128xf32>
      %34 = vector.shape_cast %4 : vector<16x128xf32> to vector<2x8x128xf32>
      %cst_26 = arith.constant dense<0.000000e+00> : vector<8x128xf32>
      %35 = vector.multi_reduction <add>, %34, %cst_26 [0] : vector<2x8x128xf32> to vector<8x128xf32>
      %36 = vector.shape_cast %35 : vector<8x128xf32> to vector<1x8x128xf32>
      %37 = arith.addf %33, %36 : vector<1x8x128xf32>
      %c0_27 = arith.constant 0 : index
      %c0_28 = arith.constant 0 : index
      %c0_29 = arith.constant 0 : index
      %38 = vector.load %arg6[%c0_27, %c0_28, %c0_29] : memref<1x8x128xf32, #tpu.memory_space<vmem>>, vector<1x8x128xf32>
      tpu.vector_store %arg6[%c0_27, %c0_28, %c0_29], %37 {strides = array<i32>} : memref<1x8x128xf32, #tpu.memory_space<vmem>>, vector<1x8x128xf32>,
    } else {
    }
    %18 = arith.extui %14 : i1 to i32
    %c0_i32_8 = arith.constant 0 : i32
    %19 = arith.cmpi ne, %18, %c0_i32_8 : i32
    scf.if %19 {
      %20 = tpu.iota {dimensions = array<i32: 0>} : vector<16x128xi32>
      %21 = tpu.iota {dimensions = array<i32: 1>} : vector<16x128xi32>
      %c16_i32 = arith.constant 16 : i32
      %22 = arith.muli %13, %c16_i32 : i32
      %23 = vector.broadcast %22 : i32 to vector<16x128xi32>
      %24 = arith.addi %23, %20 : vector<16x128xi32>
      %c128_i32 = arith.constant 128 : i32
      %25 = vector.broadcast %c128_i32 : i32 to vector<16x128xi32>
      %26 = arith.muli %24, %25 : vector<16x128xi32>
      %27 = arith.addi %26, %21 : vector<16x128xi32>
      %c2048_i32 = arith.constant 2048 : i32
      %28 = vector.broadcast %c2048_i32 : i32 to vector<16x128xi32>
      %29 = arith.cmpi slt, %27, %28 : vector<16x128xi32>
      %cst_9 = arith.constant 0.000000e+00 : f32
      %30 = vector.broadcast %cst_9 : f32 to vector<16x128xf32>
      %31 = arith.select %29, %11, %30 : vector<16x128xi1>, vector<16x128xf32>
      %cst_10 = arith.constant 0.000000e+00 : f32
      %32 = vector.broadcast %cst_10 : f32 to vector<16x128xf32>
      %33 = arith.select %29, %4, %32 : vector<16x128xi1>, vector<16x128xf32>
      %34 = arith.mulf %31, %33 : vector<16x128xf32>
      %c0_11 = arith.constant 0 : index
      %c0_12 = arith.constant 0 : index
      %c0_13 = arith.constant 0 : index
      %35 = vector.load %arg4[%c0_11, %c0_12, %c0_13] : memref<1x8x128xf32, #tpu.memory_space<vmem>>, vector<1x8x128xf32>
      %36 = vector.shape_cast %34 : vector<16x128xf32> to vector<2x8x128xf32>
      %cst_14 = arith.constant dense<0.000000e+00> : vector<8x128xf32>
      %37 = vector.multi_reduction <add>, %36, %cst_14 [0] : vector<2x8x128xf32> to vector<8x128xf32>
      %38 = vector.shape_cast %37 : vector<8x128xf32> to vector<1x8x128xf32>
      %39 = arith.addf %35, %38 : vector<1x8x128xf32>
      %c0_15 = arith.constant 0 : index
      %c0_16 = arith.constant 0 : index
      %c0_17 = arith.constant 0 : index
      %40 = vector.load %arg4[%c0_15, %c0_16, %c0_17] : memref<1x8x128xf32, #tpu.memory_space<vmem>>, vector<1x8x128xf32>
      tpu.vector_store %arg4[%c0_15, %c0_16, %c0_17], %39 {strides = array<i32>} : memref<1x8x128xf32, #tpu.memory_space<vmem>>, vector<1x8x128xf32>,
      %c0_18 = arith.constant 0 : index
      %c0_19 = arith.constant 0 : index
      %c0_20 = arith.constant 0 : index
      %41 = vector.load %arg5[%c0_18, %c0_19, %c0_20] : memref<1x8x128xf32, #tpu.memory_space<vmem>>, vector<1x8x128xf32>
      %42 = vector.shape_cast %31 : vector<16x128xf32> to vector<2x8x128xf32>
      %cst_21 = arith.constant dense<0.000000e+00> : vector<8x128xf32>
      %43 = vector.multi_reduction <add>, %42, %cst_21 [0] : vector<2x8x128xf32> to vector<8x128xf32>
      %44 = vector.shape_cast %43 : vector<8x128xf32> to vector<1x8x128xf32>
      %45 = arith.addf %41, %44 : vector<1x8x128xf32>
      %c0_22 = arith.constant 0 : index
      %c0_23 = arith.constant 0 : index
      %c0_24 = arith.constant 0 : index
      %46 = vector.load %arg5[%c0_22, %c0_23, %c0_24] : memref<1x8x128xf32, #tpu.memory_space<vmem>>, vector<1x8x128xf32>
      tpu.vector_store %arg5[%c0_22, %c0_23, %c0_24], %45 {strides = array<i32>} : memref<1x8x128xf32, #tpu.memory_space<vmem>>, vector<1x8x128xf32>,
      %c0_25 = arith.constant 0 : index
      %c0_26 = arith.constant 0 : index
      %c0_27 = arith.constant 0 : index
      %47 = vector.load %arg6[%c0_25, %c0_26, %c0_27] : memref<1x8x128xf32, #tpu.memory_space<vmem>>, vector<1x8x128xf32>
      %48 = vector.shape_cast %33 : vector<16x128xf32> to vector<2x8x128xf32>
      %cst_28 = arith.constant dense<0.000000e+00> : vector<8x128xf32>
      %49 = vector.multi_reduction <add>, %48, %cst_28 [0] : vector<2x8x128xf32> to vector<8x128xf32>
      %50 = vector.shape_cast %49 : vector<8x128xf32> to vector<1x8x128xf32>
      %51 = arith.addf %47, %50 : vector<1x8x128xf32>
      %c0_29 = arith.constant 0 : index
      %c0_30 = arith.constant 0 : index
      %c0_31 = arith.constant 0 : index
      %52 = vector.load %arg6[%c0_29, %c0_30, %c0_31] : memref<1x8x128xf32, #tpu.memory_space<vmem>>, vector<1x8x128xf32>
      tpu.vector_store %arg6[%c0_29, %c0_30, %c0_31], %51 {strides = array<i32>} : memref<1x8x128xf32, #tpu.memory_space<vmem>>, vector<1x8x128xf32>,
    } else {
    }
    return
  }
  func.func @transform_0(%arg0: i32, %arg1: i32) -> (i32, i32) {
    %c1_i32 = arith.constant 1 : i32
    %0 = arith.muli %arg0, %c1_i32 : i32
    %1 = arith.addi %0, %arg1 : i32
    %c0_i32 = arith.constant 0 : i32
    %2 = arith.minsi %1, %c0_i32 : i32
    %c0_i32_0 = arith.constant 0 : i32
    %c0_i32_1 = arith.constant 0 : i32
    return %2, %c0_i32_0 : i32, i32
  }
  func.func @transform_1(%arg0: i32, %arg1: i32) -> (i32, i32) {
    %c1_i32 = arith.constant 1 : i32
    %0 = arith.muli %arg0, %c1_i32 : i32
    %1 = arith.addi %0, %arg1 : i32
    %c0_i32 = arith.constant 0 : i32
    %2 = arith.minsi %1, %c0_i32 : i32
    %c0_i32_0 = arith.constant 0 : i32
    %c0_i32_1 = arith.constant 0 : i32
    return %2, %c0_i32_0 : i32, i32
  }
  func.func @transform_2(%arg0: i32, %arg1: i32) -> (i32, i32, i32) {
    %c0_i32 = arith.constant 0 : i32
    %c0_i32_0 = arith.constant 0 : i32
    %c0_i32_1 = arith.constant 0 : i32
    return %arg0, %c0_i32, %c0_i32_0 : i32, i32, i32
  }
  func.func @transform_3(%arg0: i32, %arg1: i32) -> (i32, i32, i32) {
    %c0_i32 = arith.constant 0 : i32
    %c0_i32_0 = arith.constant 0 : i32
    %c0_i32_1 = arith.constant 0 : i32
    return %arg0, %c0_i32, %c0_i32_0 : i32, i32, i32
  }
  func.func @transform_4(%arg0: i32, %arg1: i32) -> (i32, i32, i32) {
    %c0_i32 = arith.constant 0 : i32
    %c0_i32_0 = arith.constant 0 : i32
    %c0_i32_1 = arith.constant 0 : i32
    return %arg0, %c0_i32, %c0_i32_0 : i32, i32, i32
  }
}

</mosaic_0001>

<bundles_post_ra>
// kernel: tpu_custom_call.1
= control target key start
LH: loop header
LB: loop body
LE: loop exit
PB: predicated region body
PF: predicated region fallthrough
CT: control target
= control target key end

     0   :  { %10 = vsyncpa [#allocation3], 0  ;;  %s1302_s0 = inlined_call_operand.hbm [shape: f32[16,128], index: 0, kind: input, shape index: {}]   ;;  %s1303_s1 = inlined_call_operand.hbm [shape: f32[16,128], index: 1, kind: input, shape index: {}]   ;;  %s1304_s2 = inlined_call_operand.hbm [shape: f32[2,8,128], index: 2, kind: output, shape index: {0}]   ;;  %s1305_s3 = inlined_call_operand.hbm [shape: f32[2,8,128], index: 3, kind: output, shape index: {1}]   ;;  %s1306_s4 = inlined_call_operand.hbm [shape: f32[2,8,128], index: 4, kind: output, shape index: {2}]  }
   0x1   :  { %12 = vsyncpa [#allocation3 + $0x1], 0 }
   0x2   :  { %13 = vsyncpa [#allocation6], 0 }
   0x3   :  { %15 = vsyncpa [#allocation6 + $0x1], 0 }
   0x4   :  { %16 = vsyncpa [#allocation4], 0 }
   0x5   :  { %18 = vsyncpa [#allocation4 + $0x1], 0 }
   0x6   :  { %19 = vsyncpa [#allocation9], 0 }
   0x7   :  { %21 = vsyncpa [#allocation9 + $0x1], 0  ;;  %s998_s15 = smov 0   ;;  %s1000_s16 = smov 0  }
   0x8   :  { %s1002_s17 = smov 0   ;;  %s1004_s18 = smov 0  }
   0x9   :  { %s1006_s19 = smov 0   ;;  %s1008_s20 = smov 0  }
   0xa   :  { %s1010_s21 = smov 0   ;;  %s1012_s22 = smov 0  }
   0xb LB: > { %s1037_s23 = sadd.s32 4294967295, %s963_s22   ;;  %s1309_s24 = sadd.s32 4294967294, %s963_s22   ;;  %s963_s22 = sphi %s1012_s22, %s27_s22   ;;  %s959_s21 = sphi %s1010_s21, %s1330_s21   ;;  %s955_s20 = sphi %s1008_s20, %s1329_s20   ;;  %s951_s19 = sphi %s1006_s19, %s1292_s19   ;;  %s947_s18 = sphi %s1004_s18, %s1328_s18   ;;  %s943_s17 = sphi %s1002_s17, %s1327_s17   ;;  %s939_s16 = sphi %s1000_s16, %s1326_s16   ;;  %s935_s15 = sphi %s998_s15, %s1325_s15  }
   0xc   : > { %s39_s25 = sadd.s32 1, %s959_s21  ;;  %p932_p1 = scmp.ne.s32.totalorder %s951_s19, 0 }
   0xd   : > { %p41_p0 = scmp.ge.s32.totalorder %s39_s25, 2  ;;  %p60_p2 = scmp.eq.s32.totalorder %s963_s22, 0 }
   0xe   : > { %p65_p3 = scmp.ne.s32.totalorder %s951_s19, %s947_s18  ;;  %p66_p5 = scmp.eq.s32.totalorder %s1037_s23, 0 }
   0xf   : > { %s1332_s25 = smov (%p41_p0, %s39_s25), 0  ;;  %p1046_p4 = por %p932_p1, %p60_p2 }
  0x10   : > { %1311 = sst [smem:[#allocation15_spill]] %s1332_s25  ;;  %p1051_p6 = por %p66_p5, %p65_p3 }
  0x11   : > { %s107_s28 = ssub.s32 %s959_s21, %s1332_s25  ;;  %s110_s29 = sadd.s32 1, %s943_s17 }
  0x12   : > { %s1313_s27 = scalar_select %p1051_p6, 1, 0 }
  0x13   : > { %p108_p7 = scmp.eq.s32.totalorder %s107_s28, 0  ;;  %p120_p8 = scmp.ne.s32.totalorder %s943_s17, %s939_s16 }
  0x14   : > { %p121_p9 = scmp.eq.s32.totalorder %s1037_s23, 1  ;;  %p126_p10 = scmp.ne.s32.totalorder %s939_s16, %s935_s15 }
  0x15   : > { %s1059_s30 = scalar_select %p108_p7, %s943_s17, %s110_s29  }
  0x16   : > { %p127_p11 = scmp.eq.s32.totalorder %s1309_s24, 1  ;;  %p1068_p12 = por %p121_p9, %p120_p8 }
  0x17   : > { %p655_p1 = scmp.lt.s32.totalorder %s963_s22, 2  ;;  %s965_s7 = smov [#allocation2]  }
  0x18   : > { %s1314_s5 = scalar_select %p1068_p12, 1, 0 }
  0x19   : > { %p1073_p0 = por %p127_p11, %p126_p10  ;;  %s213_s8 = sshll.u32 %s965_s7, 4  ;;  %s214_s8 = int_to_ptr.vmem [resolvable:$true] %s213_s8 }
  0x1a   : > { %p1080_p2 = pnand %p655_p1, %p1046_p4  ;;  %s736_s12 = scalar_lea.hbm %s1302_s0, 256 }
  0x1b   : > { %s1315_s6 = scalar_select %p1073_p0, 1, 0 }
  0x1c   : > { %p737_p3 = scmp.ne.s32.totalorder %s1302_s0, %s736_s12  ;;  %p738_p5 = pneg %p1080_p2 }
  0x1d   : > { %p743_p8 = scmp.lt.u32.totalorder %s736_s12, %s736_s12  ;;  %p745_p9 = scmp.lt.u32.totalorder %s736_s12, %s1302_s0 }
  0x1e   : > { %p739_p7 = pnand %p738_p5, %p737_p3 }
  0x1f   : > { %p746_p10 = por %p745_p9, %p743_p8 }
  0x20   : > { %p740_p4 = pneg %p739_p7 }
  0x22   : > { %p747_p11 = pnand %p746_p10, %p740_p4 }
  0x24   : > { %750 = shalt.err (!%p747_p11)
}
  0x25   : > { %s751_s28 = scalar_lea.vmem %s214_s8, 256  ;;  %s758_s29 = scalar_lea.vmem %s214_s8, 512 }
  0x26   : > { %p752_p1 = scmp.ne.s32.totalorder %s214_s8, %s751_s28  ;;  %p759_p12 = scmp.lt.s32.totalorder %s214_s8, %s214_s8 }
  0x27   : > { %p760_p6 = scmp.lt.s32.totalorder %s758_s29, %s751_s28 }
  0x28   : > { %p754_p13 = pnand %p752_p1, %p738_p5 }
  0x29   : > { %p761_p3 = por %p760_p6, %p759_p12 }
  0x2a   : > { %p755_p0 = pneg %p754_p13 }
  0x2c   : > { %p762_p7 = pnand %p761_p3, %p755_p0 }
  0x2e   : > { %765 = shalt.err (!%p762_p7)
}
  0x2f   : > { %s966_s7 = smov 128   ;;  %s967_s10 = smov 8  }
  0x30   : > { %641 = dma.hbm_to_vmem [thread:$0]  (!%p1080_p2), %s1302_s0, 256, %s214_s8, [#allocation3], %s966_s7, %s966_s7, %s967_s10  }
  0x31   : > { %p609_p13 = scmp.ge.s32.totalorder %s963_s22, 1  ;;  %p245_p4 = scmp.lt.s32.totalorder %s963_s22, 3 }
  0x32   : > { %s968_s14 = smov [#allocation5]   ;;  %s766_s29 = scalar_lea.hbm %s1303_s1, 256 }
  0x33   : > { %p1111_p8 = pnand %p609_p13, %p245_p4  ;;  %s237_s18 = sshll.u32 %s968_s14, 4  ;;  %s238_s18 = int_to_ptr.vmem [resolvable:$true] %s237_s18 }
  0x34   : > { %p767_p6 = scmp.ne.s32.totalorder %s1303_s1, %s766_s29  ;;  %p773_p9 = scmp.lt.u32.totalorder %s766_s29, %s766_s29 }
  0x35   : > { %s1317_s13 = scalar_select %p1111_p8, 1, 0 }
  0x36   : > { %p769_p12 = pnand %p767_p6, %p738_p5  ;;  %p775_p10 = scmp.lt.u32.totalorder %s766_s29, %s1303_s1 }
  0x38   : > { %p770_p0 = pneg %p769_p12  ;;  %p776_p11 = por %p775_p10, %p773_p9 }
  0x3a   : > { %p777_p1 = pnand %p776_p11, %p770_p0 }
  0x3c   : > { %780 = shalt.err (!%p777_p1)
}
  0x3d   : > { %s781_s12 = scalar_lea.vmem %s238_s18, 256  ;;  %s788_s24 = scalar_lea.vmem %s238_s18, 512 }
  0x3e   : > { %p782_p3 = scmp.ne.s32.totalorder %s238_s18, %s781_s12  ;;  %p789_p4 = scmp.lt.s32.totalorder %s238_s18, %s238_s18 }
  0x3f   : > { %p790_p8 = scmp.lt.s32.totalorder %s788_s24, %s781_s12 }
  0x40   : > { %p784_p7 = pnand %p782_p3, %p738_p5 }
  0x41   : > { %p791_p6 = por %p790_p8, %p789_p4 }
  0x42   : > { %p785_p13 = pneg %p784_p7 }
  0x44   : > { %p792_p12 = pnand %p791_p6, %p785_p13 }
  0x46   : > { %795 = shalt.err (!%p792_p12)
}
  0x47   : > { %644 = dma.hbm_to_vmem [thread:$0]  (!%p1080_p2), %s1303_s1, 256, %s238_s18, [#allocation6], %s966_s7, %s966_s7, %s967_s10  }
  0x48   : > { %p1318_p0 = scmp.ne.s32.totalorder %s1317_s13, 0 }
  0x49   : > { %s251_s26 = sand.u32 (!%p1318_p0), 1, %s951_s19   ;;  %p1319_p5 = scmp.ne.s32.totalorder (!%p1318_p0), %s1313_s27, 0 }
  0x4a   : > { %249 = sbr.rel (%p1318_p0) target bundleno = 204 (0xcc), region = 28  ;;  %s610_s28 = sshll.u32 (!%p1318_p0), %s251_s26, 4 }
  0x4b   : > { %s252_s29 = scalar_lea.sflag (!%p1318_p0), [#allocation3], %s251_s26  ;;  %s255_s8 = scalar_lea.vmem (!%p1318_p0), [#allocation2], %s610_s28 }
  0x51   : > { %917 = dma.done.wait (%p1319_p5), %s252_s29, 256  }
  0x52   : > { %919 = vsyncadd (%p1319_p5), %s252_s29, 4294967040  ;;  %s261_s9 = scalar_lea.sflag [#allocation6], %s251_s26  ;;  %s264_s11 = scalar_lea.vmem [#allocation5], %s610_s28 }
  0x53   : > { %921 = dma.done.wait (%p1319_p5), %s261_s9, 256  }
  0x54   : > { %923 = vsyncadd (%p1319_p5), %s261_s9, 4294967040  ;;  %s287_s7 = sand.u32 1, %s939_s16   ;;  %v969_v0 = vmov 0.0   ;;  %v319_v1 = vld [vmem:[%s255_s8] sm:$0xff]  ;;  %v320_v2 = vld [vmem:[%s255_s8 + $0x8] sm:$0xff]  ;;  %p615_p2 = scmp.ge.s32.totalorder %s955_s20, 1 }
  0x55   : > { %s612_s10 = sshll.u32 %s287_s7, 3  ;;  %v321_v3 = vld [vmem:[%s264_s11] sm:$0xff]  ;;  %v322_v4 = vld [vmem:[%s264_s11 + $0x8] sm:$0xff]  ;;  %v323_v5 = vmul.f32 0.5, %v319_v1  ;;  %v324_v6 = vmul.f32 0.5, %v320_v2 }
  0x56   : > { %s1152_s13 = scalar_lea.vmem [#allocation7], %s612_s10  ;;  %s1155_s18 = scalar_lea.vmem [#allocation8], %s612_s10  ;;  %v348_v18 = vadd.f32 (!%p615_p2), %v322_v4, %v321_v3 }
  0x57   : > { %316 = vst [vmem:[%s1152_s13] sm:$0xff] %v969_v0  ;;  %317 = vst [vmem:[%s1155_s18] sm:$0xff] %v969_v0  ;;  %s1158_s12 = scalar_lea.vmem [#allocation10], %s612_s10  ;;  %732 = vtanh.f32 %v323_v5 }
  0x58   : > { %318 = vst [vmem:[%s1158_s12] sm:$0xff] %v969_v0  ;;  %734 = vtanh.f32 %v324_v6 }
  0x5e   : > { %v343_v15 = vld [vmem:[%s1155_s18] sm:$0xff] (!%p615_p2)  ;;  %v339_v19 = vld [vmem:[%s1152_s13] sm:$0xff] (!%p615_p2) }
  0x5f   : > { %336 = sbr.rel (%p615_p2) target bundleno = 110 (0x6e), region = 44  ;;  %v347_v17 = vld [vmem:[%s1158_s12] sm:$0xff] (!%p615_p2) }
  0x60   : > { %v349_v22 = vadd.f32 (!%p615_p2), %v348_v18, %v347_v17 }
  0x61   : > { %v733_v7 = vpop.eup %732 }
  0x62   : > { %v735_v8 = vpop.eup %734  ;;  %v327_v9 = vmul.f32 0.5, %v733_v7  ;;  %350 = vst [vmem:[%s1158_s12] sm:$0xff] (!%p615_p2), %v349_v22 }
  0x63   : > { %v328_v10 = vmul.f32 0.5, %v735_v8 }
  0x64   : > { %v329_v11 = vadd.f32 0.5, %v327_v9 }
  0x65   : > { %v330_v12 = vadd.f32 0.5, %v328_v10 }
  0x66   : > { %v337_v13 = vmul.f32 %v329_v11, %v321_v3 }
  0x67   : > { %v338_v14 = vmul.f32 %v330_v12, %v322_v4  ;;  %v344_v16 = vadd.f32 %v330_v12, %v329_v11 }
  0x69   : > { %v340_v20 = vadd.f32 %v338_v14, %v337_v13  ;;  %v345_v21 = vadd.f32 %v344_v16, %v343_v15 }
  0x6b   : > { %v341_v23 = vadd.f32 %v340_v20, %v339_v19  ;;  %346 = vst [vmem:[%s1155_s18] sm:$0xff] %v345_v21 }
  0x6d   : > { %342 = vst [vmem:[%s1152_s13] sm:$0xff] %v341_v23 }
  0x6e PF: > { %p616_p8 = scmp.lt.s32.totalorder %s955_s20, 1 }
  0x6f   : > { %v354_v24 = vlaneseq (!%p616_p8)  ;;  %s617_s27 = sshll.u32 (!%p616_p8), %s955_s20, 4 }
  0x70   : > { %353 = sbr.rel (%p616_p8) target bundleno = 132 (0x84), region = 48  ;;  %v360_v25 = vstv (!%p616_p8), %s617_s27 }
  0x71   : > { %v355_v26 = vshrl.u32 (!%p616_p8), %v354_v24, 7  ;;  %v358_v28 = vand.u32 (!%p616_p8), 127, %v354_v24  ;;  %v383_v41 = vld [vmem:[%s1158_s12] sm:$0xff] (!%p616_p8) }
  0x72   : > { %v379_v40 = vld [vmem:[%s1155_s18] sm:$0xff] (!%p616_p8) }
  0x73   : > { %v356_v27 = vadd.s32 (!%p616_p8), 8, %v355_v26  ;;  %v361_v29 = vadd.s32 (!%p616_p8), %v360_v25, %v355_v26 }
  0x74   : > { %v375_v45 = vld [vmem:[%s1152_s13] sm:$0xff] (!%p616_p8) }
  0x75   : > { %v362_v30 = vadd.s32 (!%p616_p8), %v360_v25, %v356_v27  ;;  %v363_v31 = vmul.u32 (!%p616_p8), 128, %v361_v29 }
  0x77   : > { %v364_v32 = vmul.u32 128, %v362_v30  ;;  %v365_v33 = vadd.s32 %v363_v31, %v358_v28 }
  0x79   : > { %v366_v34 = vadd.s32 %v364_v32, %v358_v28  ;;  %vm367_vm0 = vcmp.lt.s32.totalorder %v365_v33, 2048 }
  0x7a   : > { %v369_v35 = vsel %vm367_vm0, %v329_v11, 0.0  ;;  %v371_v36 = vsel %vm367_vm0, %v321_v3, 0.0 }
  0x7b   : > { %vm368_vm1 = vcmp.lt.s32.totalorder %v366_v34, 2048  ;;  %v373_v37 = vmul.f32 %v371_v36, %v369_v35 }
  0x7c   : > { %v370_v38 = vsel %vm368_vm1, %v330_v12, 0.0  ;;  %v372_v39 = vsel %vm368_vm1, %v322_v4, 0.0 }
  0x7d   : > { %v374_v42 = vmul.f32 %v372_v39, %v370_v38  ;;  %v380_v43 = vadd.f32 %v370_v38, %v369_v35  ;;  %v384_v44 = vadd.f32 %v372_v39, %v371_v36 }
  0x7f   : > { %v376_v46 = vadd.f32 %v374_v42, %v373_v37  ;;  %v381_v47 = vadd.f32 %v380_v43, %v379_v40  ;;  %v385_v48 = vadd.f32 %v384_v44, %v383_v41 }
  0x81   : > { %v377_v49 = vadd.f32 %v376_v46, %v375_v45  ;;  %382 = vst [vmem:[%s1155_s18] sm:$0xff] %v381_v47  ;;  %386 = vst [vmem:[%s1158_s12] sm:$0xff] %v385_v48 }
  0x83   : > { %378 = vst [vmem:[%s1152_s13] sm:$0xff] %v377_v49 }
  0x84 PF: > { %s392_s24 = sand.u32 1, %s1037_s23   ;;  %s1178_s25 = sshll.u32 %s955_s20, 7 }
  0x85   : > { %s1184_s28 = scalar_lea.hbm %s1305_s3, %s1178_s25  ;;  %s424_s29 = sshll.u32 %s1155_s18, 4  ;;  %s1187_s29 = int_to_ptr.vmem [resolvable:$true] %s424_s29 }
  0x86   : > { %s1193_s11 = scalar_lea.hbm %s1304_s2, %s1178_s25  ;;  %s1195_s20 = scalar_lea.sflag [#allocation9], %s392_s24 }
  0x87   : > { %s796_s23 = scalar_lea.vmem %s1187_s29, 128  ;;  %p1320_p10 = scmp.ne.s32.totalorder %s1314_s5, 0 }
  0x88   : > { %p797_p9 = scmp.ne.s32.totalorder %s1187_s29, %s796_s23  ;;  %s970_s10 = smov [#allocation8]  }
  0x89   : > { %s800_s27 = sshll.u32 %s970_s10, 4  ;;  %s801_s27 = int_to_ptr.vmem [resolvable:$false] %s800_s27 }
  0x8a   : > { %p798_p11 = pnand %p797_p9, %p1320_p10  ;;  %s802_s18 = scalar_lea.vmem %s801_s27, 256 }
  0x8b   : > { %p803_p3 = scmp.lt.s32.totalorder %s1187_s29, %s801_s27  ;;  %p804_p7 = scmp.lt.s32.totalorder %s802_s18, %s796_s23 }
  0x8c   : > { %p799_p1 = pneg %p798_p11 }
  0x8d   : > { %p805_p13 = por %p804_p7, %p803_p3 }
  0x8f   : > { %p806_p4 = pnand %p805_p13, %p799_p1 }
  0x91   : > { %809 = shalt.err (!%p806_p4)
}
  0x92   : > { %s810_s24 = scalar_lea.hbm %s1184_s28, 128  ;;  %s814_s8 = scalar_lea.hbm %s1305_s3, 256 }
  0x93   : > { %p811_p6 = scmp.ne.s32.totalorder %s1184_s28, %s810_s24  ;;  %p815_p5 = scmp.lt.u32.totalorder %s1184_s28, %s1305_s3 }
  0x94   : > { %p816_p2 = scmp.lt.u32.totalorder %s814_s8, %s810_s24  ;;  %p818_p9 = scmp.lt.u32.totalorder %s810_s24, %s1184_s28 }
  0x95   : > { %p812_p12 = pnand %p811_p6, %p1320_p10 }
  0x96   : > { %p817_p8 = por %p816_p2, %p815_p5 }
  0x97   : > { %p813_p0 = pneg %p812_p12 }
  0x98   : > { %p819_p11 = por %p818_p9, %p817_p8 }
  0x9a   : > { %p820_p1 = pnand %p819_p11, %p813_p0 }
  0x9c   : > { %823 = shalt.err (!%p820_p1)
}
  0x9d   : > { %633 = dma.vmem_to_hbm [thread:$0]  (%p1320_p10), %s1187_s29, 128, %s1184_s28, %s1195_s20  }
  0x9e   : > { %s411_s23 = sshll.u32 %s1152_s13, 4  ;;  %s1224_s14 = scalar_lea.hbm %s1306_s4, %s1178_s25  ;;  %s1226_s23 = int_to_ptr.vmem [resolvable:$true] %s411_s23 }
  0x9f   : > { %s437_s24 = sshll.u32 %s1158_s12, 4  ;;  %s388_s26 = scalar_lea.sflag [#allocation4], %s287_s7  ;;  %s438_s24 = int_to_ptr.vmem [resolvable:$true] %s437_s24 }
  0xa0   : > { %s824_s8 = scalar_lea.vmem %s1226_s23, 128  ;;  %s971_s28 = smov [#allocation7]  }
  0xa1   : > { %p825_p3 = scmp.ne.s32.totalorder %s1226_s23, %s824_s8  ;;  %s828_s13 = sshll.u32 %s971_s28, 4  ;;  %s829_s13 = int_to_ptr.vmem [resolvable:$false] %s828_s13 }
  0xa2   : > { %s830_s29 = scalar_lea.vmem %s829_s13, 256  ;;  %p831_p4 = scmp.lt.s32.totalorder %s1226_s23, %s829_s13 }
  0xa3   : > { %p826_p7 = pnand %p825_p3, %p1320_p10  ;;  %p832_p6 = scmp.lt.s32.totalorder %s830_s29, %s824_s8 }
  0xa5   : > { %p827_p13 = pneg %p826_p7  ;;  %p833_p12 = por %p832_p6, %p831_p4 }
  0xa7   : > { %p834_p0 = pnand %p833_p12, %p827_p13 }
  0xa9   : > { %837 = shalt.err (!%p834_p0)
}
  0xaa   : > { %s838_s7 = scalar_lea.hbm %s1193_s11, 128  ;;  %s842_s10 = scalar_lea.hbm %s1304_s2, 256 }
  0xab   : > { %p839_p5 = scmp.ne.s32.totalorder %s1193_s11, %s838_s7  ;;  %p843_p9 = scmp.lt.u32.totalorder %s1193_s11, %s1304_s2 }
  0xac   : > { %p844_p11 = scmp.lt.u32.totalorder %s842_s10, %s838_s7  ;;  %p846_p3 = scmp.lt.u32.totalorder %s838_s7, %s1193_s11 }
  0xad   : > { %p840_p2 = pnand %p839_p5, %p1320_p10 }
  0xae   : > { %p845_p1 = por %p844_p11, %p843_p9 }
  0xaf   : > { %p841_p8 = pneg %p840_p2 }
  0xb0   : > { %p847_p7 = por %p846_p3, %p845_p1 }
  0xb2   : > { %p848_p13 = pnand %p847_p7, %p841_p8 }
  0xb4   : > { %851 = shalt.err (!%p848_p13)
}
  0xb5   : > { %632 = dma.vmem_to_hbm [thread:$0]  (%p1320_p10), %s1226_s23, 128, %s1193_s11, %s388_s26  }
  0xb6   : > { %s852_s8 = scalar_lea.vmem %s438_s24, 128  ;;  %s972_s28 = smov [#allocation10]  }
  0xb7   : > { %p853_p4 = scmp.ne.s32.totalorder %s438_s24, %s852_s8  ;;  %s856_s13 = sshll.u32 %s972_s28, 4  ;;  %s857_s13 = int_to_ptr.vmem [resolvable:$false] %s856_s13 }
  0xb8   : > { %s858_s29 = scalar_lea.vmem %s857_s13, 256  ;;  %p859_p0 = scmp.lt.s32.totalorder %s438_s24, %s857_s13 }
  0xb9   : > { %p854_p6 = pnand %p853_p4, %p1320_p10  ;;  %p860_p5 = scmp.lt.s32.totalorder %s858_s29, %s852_s8 }
  0xbb   : > { %p855_p12 = pneg %p854_p6  ;;  %p861_p2 = por %p860_p5, %p859_p0 }
  0xbd   : > { %p862_p8 = pnand %p861_p2, %p855_p12 }
  0xbf   : > { %865 = shalt.err (!%p862_p8)
}
  0xc0   : > { %s866_s12 = scalar_lea.hbm %s1224_s14, 128  ;;  %s870_s26 = scalar_lea.hbm %s1306_s4, 256 }
  0xc1   : > { %p867_p9 = scmp.ne.s32.totalorder %s1224_s14, %s866_s12  ;;  %p871_p3 = scmp.lt.u32.totalorder %s1224_s14, %s1306_s4 }
  0xc2   : > { %p872_p7 = scmp.lt.u32.totalorder %s870_s26, %s866_s12  ;;  %p874_p4 = scmp.lt.u32.totalorder %s866_s12, %s1224_s14 }
  0xc3   : > { %p868_p11 = pnand %p867_p9, %p1320_p10 }
  0xc4   : > { %p873_p13 = por %p872_p7, %p871_p3 }
  0xc5   : > { %p869_p1 = pneg %p868_p11 }
  0xc6   : > { %p875_p6 = por %p874_p4, %p873_p13 }
  0xc8   : > { %p876_p12 = pnand %p875_p6, %p869_p1 }
  0xca   : > { %879 = shalt.err (!%p876_p12)
}
  0xcb   : > { %634 = dma.vmem_to_hbm [thread:$0]  (%p1320_p10), %s438_s24, 128, %s1224_s14, %s1195_s20  }
  0xcc PF: > { %s449_s9 = sand.u32 1, %s935_s15   ;;  %p1321_p0 = scmp.ne.s32.totalorder %s1315_s6, 0 }
  0xcd   : > { %p1322_p5 = scmp.ge.s32.totalorder %s963_s22, 2  ;;  %s450_s10 = scalar_lea.sflag [#allocation4], %s449_s9 }
  0xcf   : > { %p646_p2 = pnand %p1322_p5, %p1321_p0 }
  0xd1   : > { %925 = dma.done.wait (!%p646_p2), %s450_s10, 128  }
  0xd2   : > { %927 = vsyncadd (!%p646_p2), %s450_s10, 4294967168  ;;  %s1323_s27 = sadd.s32 4294967294, %s963_s22  }
  0xd3   : > { %s458_s18 = sand.u32 1, %s1323_s27  }
  0xd4   : > { %s459_s8 = scalar_lea.sflag [#allocation9], %s458_s18 }
  0xd5   : > { %929 = dma.done.wait (!%p646_p2), %s459_s8, 256  }
  0xd6   : > { %931 = vsyncadd (!%p646_p2), %s459_s8, 4294967040  ;;  %s27_s22 = sadd.s32 1, %s963_s22   ;;  %s1324_s5 = sld [smem:[#allocation15_spill]] }
  0xd7   : > { %p24_p10 = scmp.ge.s32.totalorder %s27_s22, 4   ;;  %s1325_s15 = smov %s939_s16 }
  0xd8   : > { %s1326_s16 = smov %s943_s17  ;;  %s1327_s17 = smov %s1059_s30 }
  0xd9   : > { %s1328_s18 = smov %s951_s19  ;;  %s1292_s19 = smov 0  }
  0xda   : > { %s1329_s20 = smov %s959_s21  ;;  %26 = sbr.rel (!%p24_p10) target bundleno = 11 (0xb), region = 130 }
  0xdc   : > { %s1330_s21 = smov %s1324_s5 }
  0xe1   :  { %473 = vsyncpa [#allocation3], 1 }
  0xe2   :  { %475 = vsyncpa [#allocation3 + $0x1], 1 }
  0xe3   :  { %476 = vsyncpa [#allocation6], 1 }
  0xe4   :  { %478 = vsyncpa [#allocation6 + $0x1], 1 }
  0xe5   :  { %479 = vsyncpa [#allocation4], 1 }
  0xe6   :  { %481 = vsyncpa [#allocation4 + $0x1], 1 }
  0xe7   :  { %482 = vsyncpa [#allocation9], 1 }
  0xe8   :  { %484 = vsyncpa [#allocation9 + $0x1], 1 }

</bundles_post_ra>
